<compile_context>
chip_gen: v5e
topology: v5e:2x2
jax: 0.10.0
libtpu: 0.0.40
codegen_flags: <defaults>
</compile_context>

<pallas_src>
import functools

import jax
import jax.numpy as jnp
from jax.experimental import pallas as pl
from jax.experimental.pallas import tpu as pltpu


def _subspace_kernel(x_ref, w1t_ref, b1_ref, w2t_ref, b2_ref, o_ref, *, inv_hw):
    # x_ref / o_ref: (Nb, C, HW)
    # w1t_ref: (C, Cr), b1_ref: (1, Cr), w2t_ref: (Cr, C), b2_ref: (1, C)

    # AdaptiveAvgPool2d(1): mean over the spatial (lane) axis.
    avg = jnp.sum(x_ref[...], axis=-1) * inv_hw                        # (Nb, C)

    # fc1 (1x1 conv) + ReLU, batched across the whole block.
    h = jnp.dot(avg, w1t_ref[...], preferred_element_type=jnp.float32) + b1_ref[...]
    h = jnp.maximum(h, 0.0)                                            # (Nb, Cr)

    # fc2 (1x1 conv) + sigmoid.
    z = jnp.dot(h, w2t_ref[...], preferred_element_type=jnp.float32) + b2_ref[...]
    g = jax.nn.sigmoid(z)                                              # (Nb, C)

    # Gate: re-read x from VMEM (cheap) instead of keeping it live in vregs
    # across the reduce/fc chain.
    o_ref[...] = x_ref[...] * g[:, :, None]


def subspace_pallas(x_nchw, w1, b1, w2, b2, *, vmem_budget_bytes=12 * 1024 * 1024):
    """SubSpace forward.

    x_nchw: (N, C, H, W) float32
    w1: (Cr, C)  fc1 1x1-conv weight (squeezed), b1: (Cr,)
    w2: (C, Cr)  fc2 1x1-conv weight (squeezed), b2: (C,)
    """
    N, C, H, W = x_nchw.shape
    Cr = w1.shape[0]
    HW = H * W

    # (N, C, H, W) -> (N, C, HW) is a free reshape (no data movement).
    x = x_nchw.reshape(N, C, HW)

    # Pre-transpose weights so in-kernel matmuls are row-major batched dots;
    # biases lane-major to match the (Nb, Cr)/(Nb, C) activations.
    w1t = jnp.asarray(w1).T.astype(jnp.float32)                        # (C, Cr)
    w2t = jnp.asarray(w2).T.astype(jnp.float32)                        # (Cr, C)
    b1r = jnp.asarray(b1).reshape(1, Cr).astype(jnp.float32)
    b2r = jnp.asarray(b2).reshape(1, C).astype(jnp.float32)

    # Pick the largest batch block whose double-buffered in+out tiles fit the
    # VMEM budget: 2 bufs(in) + 2 bufs(out) = 4 x tile bytes.
    bytes_per_batch = C * HW * 4
    nb_cap = max(1, vmem_budget_bytes // (4 * bytes_per_batch))
    Nb = 1
    for d in range(min(N, nb_cap), 0, -1):
        if N % d == 0:
            Nb = d
            break
    # TODO(synk): if a single batch item's (C, HW) tile ever exceeds VMEM,
    # a two-pass (pool pass + gate pass) tiling over HW would be needed.

    kernel = functools.partial(_subspace_kernel, inv_hw=1.0 / HW)

    out = pl.pallas_call(
        kernel,
        out_shape=jax.ShapeDtypeStruct((N, C, HW), jnp.float32),
        grid_spec=pltpu.PrefetchScalarGridSpec(
            num_scalar_prefetch=0,
            grid=(N // Nb,),
            in_specs=[
                pl.BlockSpec((Nb, C, HW), lambda i: (i, 0, 0)),
                # Tiny weights/biases: constant index_map -> resident, no re-DMA.
                pl.BlockSpec((C, Cr), lambda i: (0, 0)),
                pl.BlockSpec((1, Cr), lambda i: (0, 0)),
                pl.BlockSpec((Cr, C), lambda i: (0, 0)),
                pl.BlockSpec((1, C), lambda i: (0, 0)),
            ],
            out_specs=pl.BlockSpec((Nb, C, HW), lambda i: (i, 0, 0)),
        ),
        compiler_params=pltpu.CompilerParams(
            dimension_semantics=("parallel",),
            vmem_limit_bytes=64 * 1024 * 1024,
        ),
    )(x, w1t, b1r, w2t, b2r)

    return out.reshape(N, C, H, W)


def subspace_reference(x, w1, b1, w2, b2):
    """Pure-JAX reference matching the PyTorch SubSpace.forward."""
    avg = x.mean(axis=(2, 3))                                          # (N, C)
    h = jnp.maximum(avg @ w1.T + b1, 0.0)                              # (N, Cr)
    z = h @ w2.T + b2                                                  # (N, C)
    g = jax.nn.sigmoid(z)[:, :, None, None]                            # (N, C, 1, 1)
    return x * g


if __name__ == "__main__":
    # SubSpace(channels=4, reduction=2) on a small input.
    channels, reduction = 4, 2
    Cr = channels // reduction
    N, H, W = 2, 16, 16

    key = jax.random.PRNGKey(0)
    kx, k1, k2, k3, k4 = jax.random.split(key, 5)

    x = jax.random.normal(kx, (N, channels, H, W), dtype=jnp.float32)

    # 1x1-conv parameters (squeezed to matrices / vectors).
    w1 = 0.5 * jax.random.normal(k1, (Cr, channels), dtype=jnp.float32)
    b1 = 0.1 * jax.random.normal(k2, (Cr,), dtype=jnp.float32)
    w2 = 0.5 * jax.random.normal(k3, (channels, Cr), dtype=jnp.float32)
    b2 = 0.1 * jax.random.normal(k4, (channels,), dtype=jnp.float32)

    out = subspace_pallas(x, w1, b1, w2, b2)
    out = jax.block_until_ready(out)

    ref = subspace_reference(x, w1, b1, w2, b2)
    assert out.shape == (N, channels, H, W)
    assert jnp.allclose(out, ref, atol=1e-5, rtol=1e-5), "mismatch vs reference"

    print("KERNEL_OK")
</pallas_src>

<mosaic_0001>
module attributes {stable_mosaic.version = 11 : i64} {
  func.func @_subspace_kernel(%arg0: i32, %arg1: memref<2x4x256xf32, #tpu.memory_space<vmem>>, %arg2: memref<4x2xf32, #tpu.memory_space<vmem>>, %arg3: memref<1x2xf32, #tpu.memory_space<vmem>>, %arg4: memref<2x4xf32, #tpu.memory_space<vmem>>, %arg5: memref<1x4xf32, #tpu.memory_space<vmem>>, %arg6: memref<2x4x256xf32, #tpu.memory_space<vmem>>) attributes {dimension_semantics = [#tpu.dimension_semantics<parallel>], iteration_bounds = array<i64: 1>, scalar_prefetch = 0 : i64, scratch_operands = 0 : i64, tpu.core_type = #tpu.core_type<tc>, window_params = [{transform_indices = @transform_0, window_bounds = array<i64: 2, 4, 256>}, {pipeline_mode = #tpu.pipeline_mode<synchronous>, transform_indices = @transform_1, window_bounds = array<i64: 4, 2>}, {pipeline_mode = #tpu.pipeline_mode<synchronous>, transform_indices = @transform_2, window_bounds = array<i64: 1, 2>}, {pipeline_mode = #tpu.pipeline_mode<synchronous>, transform_indices = @transform_3, window_bounds = array<i64: 2, 4>}, {pipeline_mode = #tpu.pipeline_mode<synchronous>, transform_indices = @transform_4, window_bounds = array<i64: 1, 4>}, {transform_indices = @transform_5, window_bounds = array<i64: 2, 4, 256>}]} {
    %c0 = arith.constant 0 : index
    %c0_0 = arith.constant 0 : index
    %c0_1 = arith.constant 0 : index
    %0 = vector.load %arg1[%c0, %c0_0, %c0_1] : memref<2x4x256xf32, #tpu.memory_space<vmem>>, vector<2x4x256xf32>
    %cst = arith.constant dense<0.000000e+00> : vector<2x4xf32>
    %1 = vector.multi_reduction <add>, %0, %cst [2] : vector<2x4x256xf32> to vector<2x4xf32>
    %cst_2 = arith.constant 3.906250e-03 : f32
    %2 = vector.broadcast %cst_2 : f32 to vector<2x4xf32>
    %3 = arith.mulf %1, %2 : vector<2x4xf32>
    %c0_3 = arith.constant 0 : index
    %c0_4 = arith.constant 0 : index
    %4 = vector.load %arg2[%c0_3, %c0_4] : memref<4x2xf32, #tpu.memory_space<vmem>>, vector<4x2xf32>
    %cst_5 = arith.constant dense<0.000000e+00> : vector<2x2xf32>
    %5 = tpu.matmul %3, %4, %cst_5 {dimension_numbers = #tpu.dot_dimension_numbers<[1], [0], [0], [1], [0, 0, 1, 1], [], []>} : vector<2x4xf32>, vector<4x2xf32>, vector<2x2xf32> -> vector<2x2xf32>
    %c0_6 = arith.constant 0 : index
    %c0_7 = arith.constant 0 : index
    %6 = vector.load %arg3[%c0_6, %c0_7] : memref<1x2xf32, #tpu.memory_space<vmem>>, vector<1x2xf32>
    %7 = vector.broadcast %6 : vector<1x2xf32> to vector<2x2xf32>
    %8 = arith.addf %5, %7 : vector<2x2xf32>
    %cst_8 = arith.constant 0.000000e+00 : f32
    %9 = vector.broadcast %cst_8 : f32 to vector<2x2xf32>
    %10 = arith.maximumf %8, %9 : vector<2x2xf32>
    %c0_9 = arith.constant 0 : index
    %c0_10 = arith.constant 0 : index
    %11 = vector.load %arg4[%c0_9, %c0_10] : memref<2x4xf32, #tpu.memory_space<vmem>>, vector<2x4xf32>
    %cst_11 = arith.constant dense<0.000000e+00> : vector<2x4xf32>
    %12 = tpu.matmul %10, %11, %cst_11 {dimension_numbers = #tpu.dot_dimension_numbers<[1], [0], [0], [1], [0, 0, 1, 1], [], []>} : vector<2x2xf32>, vector<2x4xf32>, vector<2x4xf32> -> vector<2x4xf32>
    %c0_12 = arith.constant 0 : index
    %c0_13 = arith.constant 0 : index
    %13 = vector.load %arg5[%c0_12, %c0_13] : memref<1x4xf32, #tpu.memory_space<vmem>>, vector<1x4xf32>
    %14 = vector.broadcast %13 : vector<1x4xf32> to vector<2x4xf32>
    %15 = arith.addf %12, %14 : vector<2x4xf32>
    %16 = arith.negf %15 : vector<2x4xf32>
    %17 = math.exp %16 : vector<2x4xf32>
    %cst_14 = arith.constant 1.000000e+00 : f32
    %18 = vector.broadcast %cst_14 : f32 to vector<2x4xf32>
    %19 = arith.addf %18, %17 : vector<2x4xf32>
    %20 = arith.divf %18, %19 : vector<2x4xf32>
    %c0_15 = arith.constant 0 : index
    %c0_16 = arith.constant 0 : index
    %c0_17 = arith.constant 0 : index
    %21 = vector.load %arg1[%c0_15, %c0_16, %c0_17] : memref<2x4x256xf32, #tpu.memory_space<vmem>>, vector<2x4x256xf32>
    %22 = vector.shape_cast %20 : vector<2x4xf32> to vector<2x4x1xf32>
    %23 = vector.broadcast %22 : vector<2x4x1xf32> to vector<2x4x256xf32>
    %24 = arith.mulf %21, %23 : vector<2x4x256xf32>
    %c0_18 = arith.constant 0 : index
    %c0_19 = arith.constant 0 : index
    %c0_20 = arith.constant 0 : index
    %25 = vector.load %arg6[%c0_18, %c0_19, %c0_20] : memref<2x4x256xf32, #tpu.memory_space<vmem>>, vector<2x4x256xf32>
    tpu.vector_store %arg6[%c0_18, %c0_19, %c0_20], %24 {strides = array<i32>} : memref<2x4x256xf32, #tpu.memory_space<vmem>>, vector<2x4x256xf32>,
    return
  }
  func.func @transform_0(%arg0: i32) -> (i32, i32, i32) {
    %c0_i32 = arith.constant 0 : i32
    %c0_i32_0 = arith.constant 0 : i32
    %c0_i32_1 = arith.constant 0 : i32
    return %arg0, %c0_i32, %c0_i32_0 : i32, i32, i32
  }
  func.func @transform_1(%arg0: i32) -> (i32, i32) {
    %c0_i32 = arith.constant 0 : i32
    %c0_i32_0 = arith.constant 0 : i32
    %c0_i32_1 = arith.constant 0 : i32
    return %c0_i32, %c0_i32_0 : i32, i32
  }
  func.func @transform_2(%arg0: i32) -> (i32, i32) {
    %c0_i32 = arith.constant 0 : i32
    %c0_i32_0 = arith.constant 0 : i32
    %c0_i32_1 = arith.constant 0 : i32
    return %c0_i32, %c0_i32_0 : i32, i32
  }
  func.func @transform_3(%arg0: i32) -> (i32, i32) {
    %c0_i32 = arith.constant 0 : i32
    %c0_i32_0 = arith.constant 0 : i32
    %c0_i32_1 = arith.constant 0 : i32
    return %c0_i32, %c0_i32_0 : i32, i32
  }
  func.func @transform_4(%arg0: i32) -> (i32, i32) {
    %c0_i32 = arith.constant 0 : i32
    %c0_i32_0 = arith.constant 0 : i32
    %c0_i32_1 = arith.constant 0 : i32
    return %c0_i32, %c0_i32_0 : i32, i32
  }
  func.func @transform_5(%arg0: i32) -> (i32, i32, i32) {
    %c0_i32 = arith.constant 0 : i32
    %c0_i32_0 = arith.constant 0 : i32
    %c0_i32_1 = arith.constant 0 : i32
    return %arg0, %c0_i32, %c0_i32_0 : i32, i32, i32
  }
}

</mosaic_0001>

<bundles_post_ra>
// kernel: tpu_custom_call.1
= control target key start
LH: loop header
LB: loop body
LE: loop exit
PB: predicated region body
PF: predicated region fallthrough
CT: control target
= control target key end

     0   :  { %10 = vsyncpa [#allocation3], 0  ;;  %s343_s0 = inlined_call_operand.hbm [shape: f32[2,4,256], index: 0, kind: input, shape index: {}]   ;;  %s344_s1 = inlined_call_operand.vmem [shape: f32[4,2], index: 1, kind: input, shape index: {}]   ;;  %s345_s2 = inlined_call_operand.vmem [shape: f32[1,2], index: 2, kind: input, shape index: {}]   ;;  %s346_s3 = inlined_call_operand.vmem [shape: f32[2,4], index: 3, kind: input, shape index: {}]   ;;  %s347_s4 = inlined_call_operand.vmem [shape: f32[1,4], index: 4, kind: input, shape index: {}]   ;;  %s348_s5 = inlined_call_operand.hbm [shape: f32[2,4,256], index: 5, kind: output, shape index: {}]  }
   0x1   :  { %11 = vsyncpa [#allocation4], 0  ;;  %s16_s20 = sshll.u32 %s343_s0, 4  ;;  %s276_s21 = smov [#allocation2]   ;;  %s17_s20 = int_to_ptr.hbm [resolvable:$true] %s16_s20 }
   0x2   :  { %s18_s22 = sshll.u32 %s276_s21, 4  ;;  %s277_s23 = smov 128   ;;  %s19_s22 = int_to_ptr.vmem [resolvable:$true] %s18_s22 }
   0x3   :  { %s278_s24 = smov 8  }
   0x4   :  { %24 = dma.hbm_to_vmem [thread:$0]  %s17_s20, 256, %s19_s22, [#allocation3], %s277_s23, %s277_s23, %s278_s24  }
   0x5   :  { %272 = dma.done.wait [#allocation3], 256  }
   0x6   :  { %273 = vsyncadd [#allocation3], 4294967040  ;;  %v317_v0 = vld [vmem:[#allocation2] sm:$0xff]  ;;  %v319_v1 = vld [vmem:[#allocation2 + $0x8] sm:$0xff]  ;;  %vm52_vm0 = vcmask 1043456   ;;  %v72_v14 = vlaneseq  ;;  %vm76_vm1 = vcmask 1041409  }
   0x7   :  { %41 = vst [vmem:[#allocation1] ss:$2 sm:$0xff] %v317_v0  ;;  %v65_v12 = vld [vmem:[%s344_s1] sm:$0xf]  ;;  %vm78_vm2 = vcmask 31744   ;;  %vm114_vm3 = vcmask 1041408  }
   0x8   :  { %45 = vst [vmem:[#allocation1 + $0x10] ss:$2 sm:$0xff] %v319_v1  ;;  %206 = vmatpush.msk.msra.mxu0 %vm52_vm0, %v65_v12  ;;  %v73_v15 = vand.u32 127, %v72_v14  ;;  %v105_v22 = vld [vmem:[%s346_s3] sm:$0x3]  ;;  %vm110_vm4 = vcmask 15360  }
   0x9   :  { %208 = vmatpush.msk.msra.mxu1 %vm114_vm3, %v105_v22  ;;  %v218_v23 = vld [vmem:[%s345_s2] ss:$0 sm:$0xff]  ;;  %v159_v27 = vshrl.u32 %v72_v14, 7  ;;  %v279_v46 = vmov 839922192   ;;  %s280_s2 = smov [#allocation5]  }
   0xa   :  { %v219_v28 = vld [vmem:[%s347_s4] ss:$0 sm:$0xff]  ;;  %v174_v47 = vunpack.c.l.s4 %v279_v46  ;;  %s191_s3 = sshll.u32 %s280_s2, 4  ;;  %s193_s7 = sshll.u32 %s348_s5, 4  ;;  %s192_s3 = int_to_ptr.vmem [resolvable:$true] %s191_s3  ;;  %s194_s7 = int_to_ptr.hbm [resolvable:$true] %s193_s7 }
   0xb   :  { %216 = vset.pattern.permute.xlu1 %v159_v27  ;;  %217 = vset.pattern.permute.xlu0 %v159_v27 }
   0xc   :  { %v175_v48 = vunpack.c.0.s8 %v174_v47 }
   0xe   :  { %v42_v2 = vld.sshfl [vmem:[#allocation1] sm:$0xff pattern:$0x75316420]  ;;  %v43_v3 = vld.sshfl [vmem:[#allocation1 + $0x8] sm:$0xff pattern:$0x75316420] }
   0xf   :  { %v53_v4 = vsel %vm52_vm0, %v42_v2, 0.0  ;;  %v54_v5 = vsel %vm52_vm0, %v43_v3, 0.0  ;;  %v46_v7 = vld.sshfl [vmem:[#allocation1 + $0x10] sm:$0xff pattern:$0x75316420] }
  0x10   :  { %v55_v6 = vadd.f32 %v54_v5, %v53_v4  ;;  %v47_v8 = vld.sshfl [vmem:[#allocation1 + $0x18] sm:$0xff pattern:$0x75316420]  ;;  %v58_v9 = vsel %vm52_vm0, %v46_v7, 0.0 }
  0x11   :  { %v59_v10 = vsel %vm52_vm0, %v47_v8, 0.0 }
  0x12   :  { %56 = vadd.xlane.f32.xlu0 %v55_v6  ;;  %v60_v11 = vadd.f32 %v59_v10, %v58_v9 }
  0x1a   :  { %61 = vadd.xlane.f32.xlu0 %v60_v11 }
  0x85   :  { %v57_v13 = vpop.xlane.xlu0 %56 }
  0x86   :  { %v63_v16 = vmul.f32 0.00390625, %v57_v13 }
  0x88   :  { %v74_v19 = vperm.slane %v63_v16, %v73_v15 }
  0x8d   :  { %v62_v17 = vpop.xlane.xlu0 %61 }
  0x8e   :  { %v64_v18 = vmul.f32 0.00390625, %v62_v17 }
  0x90   :  { %v75_v20 = vperm.slane %v64_v18, %v73_v15 }
  0x92   :  { %v77_v21 = vsel %vm76_vm1, %v75_v20, %v74_v19 }
  0x93   :  { %207 = vmatmul.msk.f32.vlgmr.msra.gmra.mxu0 %vm78_vm2, %v77_v21 }
 0x110   :  { %v101_v24 = vpop.f32.mrf.mxu0 }
 0x111   :  { %v102_v25 = vadd.f32 %v218_v23, %v101_v24 }
 0x113   :  { %v104_v26 = vmax.f32 %v102_v25, 0.0 }
 0x115   :  { %209 = vmatmul.msk.f32.vlgmr.msra.gmra.mxu1 %vm110_vm4, %v104_v26 }
 0x192   :  { %v135_v29 = vpop.f32.mrf.mxu1 }
 0x193   :  { %v136_v30 = vadd.f32 %v219_v28, %v135_v29 }
 0x195   :  { %v210_v31 = vmul.f32 -1.442695, %v136_v30 }
 0x197   :  { %220 = vpow2.f32 %v210_v31 }
 0x19d   :  { %v221_v32 = vpop.eup %220 }
 0x19e   :  { %v141_v33 = vadd.f32 1.0, %v221_v32 }
 0x1a0   :  { %222 = vrcp.f32 %v141_v33  ;;  %v153_v37 = vand.u32 2147483648, %v141_v33  ;;  %v151_v39 = vand.u32 2147483647, %v141_v33  ;;  %vm147_vm6 = vweird.f32 %v141_v33 }
 0x1a2   :  { %v154_v41 = vor.u32 1.1754944e-38, %v153_v37  ;;  %vm152_vm8 = vcmp.eq.f32.partialorder %v151_v39, 8.507059e+37 }
 0x1a6   :  { %v223_v34 = vpop.eup %222 }
 0x1a7   :  { %v143_v35 = vmul.f32 %v223_v34, %v141_v33  ;;  %vm148_vm5 = vweird.f32 %v223_v34 }
 0x1a8   :  { %vm149_vm7 = vmor %vm147_vm6, %vm148_vm5 }
 0x1a9   :  { %v144_v36 = vsub.f32 1.0, %v143_v35 }
 0x1ab   :  { %v145_v38 = vmul.f32 %v223_v34, %v144_v36 }
 0x1ad   :  { %v146_v40 = vadd.f32 %v223_v34, %v145_v38 }
 0x1af   :  { %v150_v42 = vsel %vm149_vm7, %v223_v34, %v146_v40 }
 0x1b0   :  { %v155_v43 = vsel %vm152_vm8, %v154_v41, %v150_v42 }
 0x1b1   :  { %v157_v44 = vperm.slane %v155_v43, 0  ;;  %v164_v45 = vperm.slane %v155_v43, 1 }
 0x1b3   :  { %162 = vperm.xlu1 %216, %v157_v44  }
 0x1bb   :  { %169 = vperm.xlu1 %216, %v164_v45  }
 0x225   :  { %v163_v49 = vpop.permute.xlu1 %162 }
 0x226   :  { %v176_v50 = vperm.slane %v163_v49, %v175_v48 }
 0x228   :  { %v183_v51 = vmul.f32 %v176_v50, %v317_v0 }
 0x22a   :  { %185 = vst [vmem:[#allocation5] sm:$0xff] %v183_v51 }
 0x22d   :  { %v170_v52 = vpop.permute.xlu1 %169 }
 0x22e   :  { %v180_v53 = vperm.slane %v170_v52, %v175_v48 }
 0x230   :  { %v184_v54 = vmul.f32 %v180_v53, %v319_v1 }
 0x232   :  { %186 = vst [vmem:[#allocation5 + $0x8] sm:$0xff] %v184_v54 }
 0x233   :  { %199 = dma.vmem_to_hbm [thread:$0]  %s192_s3, 256, %s194_s7, [#allocation4], %s277_s23, %s277_s23, %s278_s24  }
 0x234   :  { %274 = dma.done.wait [#allocation4], 256  }
 0x235   :  { %275 = vsyncadd [#allocation4], 4294967040 }
 0x236   :  { %204 = vsyncpa [#allocation3], 1 }
 0x237   :  { %205 = vsyncpa [#allocation4], 1 }

</bundles_post_ra>
